<compile_context>
chip_gen: v6e
topology: v6e:2x2x1
jax: 0.10.0
libtpu: 0.0.40
codegen_flags: <defaults>
</compile_context>

<pallas_src>
import functools
import math

import jax
import jax.numpy as jnp
from jax import lax
from jax.experimental import pallas as pl
from jax.experimental.pallas import tpu as pltpu


def _token_embedding_kernel(tok_ref, table_ref, out_ref, *, tile_n, scale):
    """Gather + scale one tile of tokens.

    tok_ref:   SMEM (n_padded,) int32  -- scalar-prefetched token ids
    table_ref: VMEM (vocab, emb)       -- resident embedding table
    out_ref:   VMEM (tile_n, emb)      -- output tile for this grid step
    """
    base = pl.program_id(0) * tile_n

    def body(r, carry):
        tok = tok_ref[base + r]
        out_ref[pl.ds(r, 1), :] = table_ref[pl.ds(tok, 1), :] * scale
        return carry

    # Fully unroll short tiles for LLO scheduler visibility; partially unroll
    # large ones to keep code size bounded.
    unroll = True if tile_n <= 64 else 8
    lax.fori_loop(0, tile_n, body, 0, unroll=unroll)


def _choose_tile_n(n: int) -> int:
    for t in (512, 256, 128, 64, 32, 16, 8):
        if n >= t:
            return t
    return 8


def token_embedding(tokens: jax.Array, emb_table: jax.Array,
                    tile_n: int | None = None) -> jax.Array:
    """tokens: int array (batch, seq); emb_table: (vocab, emb) float32."""
    batch, seq = tokens.shape
    vocab, emb = emb_table.shape
    n = batch * seq
    scale = math.sqrt(float(emb))

    if tile_n is None:
        tile_n = _choose_tile_n(n)
    n_padded = ((n + tile_n - 1) // tile_n) * tile_n
    num_tiles = n_padded // tile_n

    tok_flat = tokens.reshape(n).astype(jnp.int32)       # .long() equivalent
    if n_padded != n:
        # Pad with token id 0 (always a valid row); padded rows are sliced off.
        tok_flat = jnp.pad(tok_flat, (0, n_padded - n))

    # Explicit VMEM budget: resident table + double-buffered output tile.
    itemsize = jnp.dtype(emb_table.dtype).itemsize
    table_bytes = vocab * emb * itemsize
    tile_bytes = tile_n * emb * itemsize
    vmem_needed = table_bytes + 2 * tile_bytes + (1 << 20)
    vmem_limit = int(min(max(vmem_needed, 16 << 20), 64 << 20))

    grid_spec = pltpu.PrefetchScalarGridSpec(
        num_scalar_prefetch=1,
        grid=(num_tiles,),
        in_specs=[
            # Full table as one block; constant block index -> loaded once,
            # stays resident in VMEM across all grid steps.
            pl.BlockSpec((vocab, emb), lambda i, tok: (0, 0)),
        ],
        out_specs=pl.BlockSpec((tile_n, emb), lambda i, tok: (i, 0)),
    )

    kernel = pl.pallas_call(
        functools.partial(_token_embedding_kernel, tile_n=tile_n, scale=scale),
        out_shape=jax.ShapeDtypeStruct((n_padded, emb), emb_table.dtype),
        grid_spec=grid_spec,
        compiler_params=pltpu.CompilerParams(
            dimension_semantics=("parallel",),
            vmem_limit_bytes=vmem_limit,
        ),
    )

    out = kernel(tok_flat, emb_table)                    # (n_padded, emb)
    return out[:n].reshape(batch, seq, emb)


if __name__ == "__main__":
    key = jax.random.PRNGKey(0)
    k_emb, k_tok = jax.random.split(key)

    vocab_size = 32
    emb_size = 128
    batch, seq = 2, 8

    # Deterministic "nn.Embedding" weight (PyTorch default init is N(0,1)).
    emb_table = jax.random.normal(k_emb, (vocab_size, emb_size), dtype=jnp.float32)
    tokens = jax.random.randint(k_tok, (batch, seq), 0, vocab_size, dtype=jnp.int32)

    out = token_embedding(tokens, emb_table)
    out = jax.block_until_ready(out)

    # Reference check in plain JAX.
    ref = jnp.take(emb_table, tokens, axis=0) * math.sqrt(float(emb_size))
    assert out.shape == (batch, seq, emb_size)
    assert jnp.allclose(out, ref, atol=1e-6, rtol=1e-6)

    print("KERNEL_OK")
</pallas_src>

<mosaic_0001>
module attributes {stable_mosaic.version = 11 : i64} {
  func.func @_token_embedding_kernel(%arg0: i32, %arg1: memref<16xi32, #tpu.memory_space<smem>>, %arg2: memref<32x128xf32, #tpu.memory_space<vmem>>, %arg3: memref<16x128xf32, #tpu.memory_space<vmem>>) attributes {dimension_semantics = [#tpu.dimension_semantics<parallel>], iteration_bounds = array<i64: 1>, scalar_prefetch = 1 : i64, scratch_operands = 0 : i64, tpu.core_type = #tpu.core_type<tc>, window_params = [{pipeline_mode = #tpu.pipeline_mode<synchronous>, transform_indices = @transform_0, window_bounds = array<i64: 32, 128>}, {transform_indices = @transform_1, window_bounds = array<i64: 16, 128>}]} {
    %c16_i32 = arith.constant 16 : i32
    %0 = arith.muli %arg0, %c16_i32 : i32
    %c0_i32 = arith.constant 0 : i32
    %1 = arith.addi %0, %c0_i32 : i32
    %2 = arith.index_cast %1 : i32 to index
    %3 = memref.load %arg1[%2] : memref<16xi32, #tpu.memory_space<smem>>
    %4 = arith.index_cast %3 : i32 to index
    %c0 = arith.constant 0 : index
    %5 = vector.load %arg2[%4, %c0] : memref<32x128xf32, #tpu.memory_space<vmem>>, vector<1x128xf32>
    %cst = arith.constant 11.3137083 : f32
    %6 = vector.broadcast %cst : f32 to vector<1x128xf32>
    %7 = arith.mulf %5, %6 : vector<1x128xf32>
    %8 = arith.index_cast %c0_i32 : i32 to index
    %c0_0 = arith.constant 0 : index
    %9 = vector.load %arg3[%8, %c0_0] : memref<16x128xf32, #tpu.memory_space<vmem>>, vector<1x128xf32>
    tpu.vector_store %arg3[%8, %c0_0], %7 {strides = array<i32>} : memref<16x128xf32, #tpu.memory_space<vmem>>, vector<1x128xf32>,
    %c1_i32 = arith.constant 1 : i32
    %10 = arith.addi %0, %c1_i32 : i32
    %11 = arith.index_cast %10 : i32 to index
    %12 = memref.load %arg1[%11] : memref<16xi32, #tpu.memory_space<smem>>
    %13 = arith.index_cast %12 : i32 to index
    %c0_1 = arith.constant 0 : index
    %14 = vector.load %arg2[%13, %c0_1] : memref<32x128xf32, #tpu.memory_space<vmem>>, vector<1x128xf32>
    %cst_2 = arith.constant 11.3137083 : f32
    %15 = vector.broadcast %cst_2 : f32 to vector<1x128xf32>
    %16 = arith.mulf %14, %15 : vector<1x128xf32>
    %17 = arith.index_cast %c1_i32 : i32 to index
    %c0_3 = arith.constant 0 : index
    %18 = vector.load %arg3[%17, %c0_3] : memref<16x128xf32, #tpu.memory_space<vmem>>, vector<1x128xf32>
    tpu.vector_store %arg3[%17, %c0_3], %16 {strides = array<i32>} : memref<16x128xf32, #tpu.memory_space<vmem>>, vector<1x128xf32>,
    %c2_i32 = arith.constant 2 : i32
    %19 = arith.addi %0, %c2_i32 : i32
    %20 = arith.index_cast %19 : i32 to index
    %21 = memref.load %arg1[%20] : memref<16xi32, #tpu.memory_space<smem>>
    %22 = arith.index_cast %21 : i32 to index
    %c0_4 = arith.constant 0 : index
    %23 = vector.load %arg2[%22, %c0_4] : memref<32x128xf32, #tpu.memory_space<vmem>>, vector<1x128xf32>
    %cst_5 = arith.constant 11.3137083 : f32
    %24 = vector.broadcast %cst_5 : f32 to vector<1x128xf32>
    %25 = arith.mulf %23, %24 : vector<1x128xf32>
    %26 = arith.index_cast %c2_i32 : i32 to index
    %c0_6 = arith.constant 0 : index
    %27 = vector.load %arg3[%26, %c0_6] : memref<16x128xf32, #tpu.memory_space<vmem>>, vector<1x128xf32>
    tpu.vector_store %arg3[%26, %c0_6], %25 {strides = array<i32>} : memref<16x128xf32, #tpu.memory_space<vmem>>, vector<1x128xf32>,
    %c3_i32 = arith.constant 3 : i32
    %28 = arith.addi %0, %c3_i32 : i32
    %29 = arith.index_cast %28 : i32 to index
    %30 = memref.load %arg1[%29] : memref<16xi32, #tpu.memory_space<smem>>
    %31 = arith.index_cast %30 : i32 to index
    %c0_7 = arith.constant 0 : index
    %32 = vector.load %arg2[%31, %c0_7] : memref<32x128xf32, #tpu.memory_space<vmem>>, vector<1x128xf32>
    %cst_8 = arith.constant 11.3137083 : f32
    %33 = vector.broadcast %cst_8 : f32 to vector<1x128xf32>
    %34 = arith.mulf %32, %33 : vector<1x128xf32>
    %35 = arith.index_cast %c3_i32 : i32 to index
    %c0_9 = arith.constant 0 : index
    %36 = vector.load %arg3[%35, %c0_9] : memref<16x128xf32, #tpu.memory_space<vmem>>, vector<1x128xf32>
    tpu.vector_store %arg3[%35, %c0_9], %34 {strides = array<i32>} : memref<16x128xf32, #tpu.memory_space<vmem>>, vector<1x128xf32>,
    %c4_i32 = arith.constant 4 : i32
    %37 = arith.addi %0, %c4_i32 : i32
    %38 = arith.index_cast %37 : i32 to index
    %39 = memref.load %arg1[%38] : memref<16xi32, #tpu.memory_space<smem>>
    %40 = arith.index_cast %39 : i32 to index
    %c0_10 = arith.constant 0 : index
    %41 = vector.load %arg2[%40, %c0_10] : memref<32x128xf32, #tpu.memory_space<vmem>>, vector<1x128xf32>
    %cst_11 = arith.constant 11.3137083 : f32
    %42 = vector.broadcast %cst_11 : f32 to vector<1x128xf32>
    %43 = arith.mulf %41, %42 : vector<1x128xf32>
    %44 = arith.index_cast %c4_i32 : i32 to index
    %c0_12 = arith.constant 0 : index
    %45 = vector.load %arg3[%44, %c0_12] : memref<16x128xf32, #tpu.memory_space<vmem>>, vector<1x128xf32>
    tpu.vector_store %arg3[%44, %c0_12], %43 {strides = array<i32>} : memref<16x128xf32, #tpu.memory_space<vmem>>, vector<1x128xf32>,
    %c5_i32 = arith.constant 5 : i32
    %46 = arith.addi %0, %c5_i32 : i32
    %47 = arith.index_cast %46 : i32 to index
    %48 = memref.load %arg1[%47] : memref<16xi32, #tpu.memory_space<smem>>
    %49 = arith.index_cast %48 : i32 to index
    %c0_13 = arith.constant 0 : index
    %50 = vector.load %arg2[%49, %c0_13] : memref<32x128xf32, #tpu.memory_space<vmem>>, vector<1x128xf32>
    %cst_14 = arith.constant 11.3137083 : f32
    %51 = vector.broadcast %cst_14 : f32 to vector<1x128xf32>
    %52 = arith.mulf %50, %51 : vector<1x128xf32>
    %53 = arith.index_cast %c5_i32 : i32 to index
    %c0_15 = arith.constant 0 : index
    %54 = vector.load %arg3[%53, %c0_15] : memref<16x128xf32, #tpu.memory_space<vmem>>, vector<1x128xf32>
    tpu.vector_store %arg3[%53, %c0_15], %52 {strides = array<i32>} : memref<16x128xf32, #tpu.memory_space<vmem>>, vector<1x128xf32>,
    %c6_i32 = arith.constant 6 : i32
    %55 = arith.addi %0, %c6_i32 : i32
    %56 = arith.index_cast %55 : i32 to index
    %57 = memref.load %arg1[%56] : memref<16xi32, #tpu.memory_space<smem>>
    %58 = arith.index_cast %57 : i32 to index
    %c0_16 = arith.constant 0 : index
    %59 = vector.load %arg2[%58, %c0_16] : memref<32x128xf32, #tpu.memory_space<vmem>>, vector<1x128xf32>
    %cst_17 = arith.constant 11.3137083 : f32
    %60 = vector.broadcast %cst_17 : f32 to vector<1x128xf32>
    %61 = arith.mulf %59, %60 : vector<1x128xf32>
    %62 = arith.index_cast %c6_i32 : i32 to index
    %c0_18 = arith.constant 0 : index
    %63 = vector.load %arg3[%62, %c0_18] : memref<16x128xf32, #tpu.memory_space<vmem>>, vector<1x128xf32>
    tpu.vector_store %arg3[%62, %c0_18], %61 {strides = array<i32>} : memref<16x128xf32, #tpu.memory_space<vmem>>, vector<1x128xf32>,
    %c7_i32 = arith.constant 7 : i32
    %64 = arith.addi %0, %c7_i32 : i32
    %65 = arith.index_cast %64 : i32 to index
    %66 = memref.load %arg1[%65] : memref<16xi32, #tpu.memory_space<smem>>
    %67 = arith.index_cast %66 : i32 to index
    %c0_19 = arith.constant 0 : index
    %68 = vector.load %arg2[%67, %c0_19] : memref<32x128xf32, #tpu.memory_space<vmem>>, vector<1x128xf32>
    %cst_20 = arith.constant 11.3137083 : f32
    %69 = vector.broadcast %cst_20 : f32 to vector<1x128xf32>
    %70 = arith.mulf %68, %69 : vector<1x128xf32>
    %71 = arith.index_cast %c7_i32 : i32 to index
    %c0_21 = arith.constant 0 : index
    %72 = vector.load %arg3[%71, %c0_21] : memref<16x128xf32, #tpu.memory_space<vmem>>, vector<1x128xf32>
    tpu.vector_store %arg3[%71, %c0_21], %70 {strides = array<i32>} : memref<16x128xf32, #tpu.memory_space<vmem>>, vector<1x128xf32>,
    %c8_i32 = arith.constant 8 : i32
    %73 = arith.addi %0, %c8_i32 : i32
    %74 = arith.index_cast %73 : i32 to index
    %75 = memref.load %arg1[%74] : memref<16xi32, #tpu.memory_space<smem>>
    %76 = arith.index_cast %75 : i32 to index
    %c0_22 = arith.constant 0 : index
    %77 = vector.load %arg2[%76, %c0_22] : memref<32x128xf32, #tpu.memory_space<vmem>>, vector<1x128xf32>
    %cst_23 = arith.constant 11.3137083 : f32
    %78 = vector.broadcast %cst_23 : f32 to vector<1x128xf32>
    %79 = arith.mulf %77, %78 : vector<1x128xf32>
    %80 = arith.index_cast %c8_i32 : i32 to index
    %c0_24 = arith.constant 0 : index
    %81 = vector.load %arg3[%80, %c0_24] : memref<16x128xf32, #tpu.memory_space<vmem>>, vector<1x128xf32>
    tpu.vector_store %arg3[%80, %c0_24], %79 {strides = array<i32>} : memref<16x128xf32, #tpu.memory_space<vmem>>, vector<1x128xf32>,
    %c9_i32 = arith.constant 9 : i32
    %82 = arith.addi %0, %c9_i32 : i32
    %83 = arith.index_cast %82 : i32 to index
    %84 = memref.load %arg1[%83] : memref<16xi32, #tpu.memory_space<smem>>
    %85 = arith.index_cast %84 : i32 to index
    %c0_25 = arith.constant 0 : index
    %86 = vector.load %arg2[%85, %c0_25] : memref<32x128xf32, #tpu.memory_space<vmem>>, vector<1x128xf32>
    %cst_26 = arith.constant 11.3137083 : f32
    %87 = vector.broadcast %cst_26 : f32 to vector<1x128xf32>
    %88 = arith.mulf %86, %87 : vector<1x128xf32>
    %89 = arith.index_cast %c9_i32 : i32 to index
    %c0_27 = arith.constant 0 : index
    %90 = vector.load %arg3[%89, %c0_27] : memref<16x128xf32, #tpu.memory_space<vmem>>, vector<1x128xf32>
    tpu.vector_store %arg3[%89, %c0_27], %88 {strides = array<i32>} : memref<16x128xf32, #tpu.memory_space<vmem>>, vector<1x128xf32>,
    %c10_i32 = arith.constant 10 : i32
    %91 = arith.addi %0, %c10_i32 : i32
    %92 = arith.index_cast %91 : i32 to index
    %93 = memref.load %arg1[%92] : memref<16xi32, #tpu.memory_space<smem>>
    %94 = arith.index_cast %93 : i32 to index
    %c0_28 = arith.constant 0 : index
    %95 = vector.load %arg2[%94, %c0_28] : memref<32x128xf32, #tpu.memory_space<vmem>>, vector<1x128xf32>
    %cst_29 = arith.constant 11.3137083 : f32
    %96 = vector.broadcast %cst_29 : f32 to vector<1x128xf32>
    %97 = arith.mulf %95, %96 : vector<1x128xf32>
    %98 = arith.index_cast %c10_i32 : i32 to index
    %c0_30 = arith.constant 0 : index
    %99 = vector.load %arg3[%98, %c0_30] : memref<16x128xf32, #tpu.memory_space<vmem>>, vector<1x128xf32>
    tpu.vector_store %arg3[%98, %c0_30], %97 {strides = array<i32>} : memref<16x128xf32, #tpu.memory_space<vmem>>, vector<1x128xf32>,
    %c11_i32 = arith.constant 11 : i32
    %100 = arith.addi %0, %c11_i32 : i32
    %101 = arith.index_cast %100 : i32 to index
    %102 = memref.load %arg1[%101] : memref<16xi32, #tpu.memory_space<smem>>
    %103 = arith.index_cast %102 : i32 to index
    %c0_31 = arith.constant 0 : index
    %104 = vector.load %arg2[%103, %c0_31] : memref<32x128xf32, #tpu.memory_space<vmem>>, vector<1x128xf32>
    %cst_32 = arith.constant 11.3137083 : f32
    %105 = vector.broadcast %cst_32 : f32 to vector<1x128xf32>
    %106 = arith.mulf %104, %105 : vector<1x128xf32>
    %107 = arith.index_cast %c11_i32 : i32 to index
    %c0_33 = arith.constant 0 : index
    %108 = vector.load %arg3[%107, %c0_33] : memref<16x128xf32, #tpu.memory_space<vmem>>, vector<1x128xf32>
    tpu.vector_store %arg3[%107, %c0_33], %106 {strides = array<i32>} : memref<16x128xf32, #tpu.memory_space<vmem>>, vector<1x128xf32>,
    %c12_i32 = arith.constant 12 : i32
    %109 = arith.addi %0, %c12_i32 : i32
    %110 = arith.index_cast %109 : i32 to index
    %111 = memref.load %arg1[%110] : memref<16xi32, #tpu.memory_space<smem>>
    %112 = arith.index_cast %111 : i32 to index
    %c0_34 = arith.constant 0 : index
    %113 = vector.load %arg2[%112, %c0_34] : memref<32x128xf32, #tpu.memory_space<vmem>>, vector<1x128xf32>
    %cst_35 = arith.constant 11.3137083 : f32
    %114 = vector.broadcast %cst_35 : f32 to vector<1x128xf32>
    %115 = arith.mulf %113, %114 : vector<1x128xf32>
    %116 = arith.index_cast %c12_i32 : i32 to index
    %c0_36 = arith.constant 0 : index
    %117 = vector.load %arg3[%116, %c0_36] : memref<16x128xf32, #tpu.memory_space<vmem>>, vector<1x128xf32>
    tpu.vector_store %arg3[%116, %c0_36], %115 {strides = array<i32>} : memref<16x128xf32, #tpu.memory_space<vmem>>, vector<1x128xf32>,
    %c13_i32 = arith.constant 13 : i32
    %118 = arith.addi %0, %c13_i32 : i32
    %119 = arith.index_cast %118 : i32 to index
    %120 = memref.load %arg1[%119] : memref<16xi32, #tpu.memory_space<smem>>
    %121 = arith.index_cast %120 : i32 to index
    %c0_37 = arith.constant 0 : index
    %122 = vector.load %arg2[%121, %c0_37] : memref<32x128xf32, #tpu.memory_space<vmem>>, vector<1x128xf32>
    %cst_38 = arith.constant 11.3137083 : f32
    %123 = vector.broadcast %cst_38 : f32 to vector<1x128xf32>
    %124 = arith.mulf %122, %123 : vector<1x128xf32>
    %125 = arith.index_cast %c13_i32 : i32 to index
    %c0_39 = arith.constant 0 : index
    %126 = vector.load %arg3[%125, %c0_39] : memref<16x128xf32, #tpu.memory_space<vmem>>, vector<1x128xf32>
    tpu.vector_store %arg3[%125, %c0_39], %124 {strides = array<i32>} : memref<16x128xf32, #tpu.memory_space<vmem>>, vector<1x128xf32>,
    %c14_i32 = arith.constant 14 : i32
    %127 = arith.addi %0, %c14_i32 : i32
    %128 = arith.index_cast %127 : i32 to index
    %129 = memref.load %arg1[%128] : memref<16xi32, #tpu.memory_space<smem>>
    %130 = arith.index_cast %129 : i32 to index
    %c0_40 = arith.constant 0 : index
    %131 = vector.load %arg2[%130, %c0_40] : memref<32x128xf32, #tpu.memory_space<vmem>>, vector<1x128xf32>
    %cst_41 = arith.constant 11.3137083 : f32
    %132 = vector.broadcast %cst_41 : f32 to vector<1x128xf32>
    %133 = arith.mulf %131, %132 : vector<1x128xf32>
    %134 = arith.index_cast %c14_i32 : i32 to index
    %c0_42 = arith.constant 0 : index
    %135 = vector.load %arg3[%134, %c0_42] : memref<16x128xf32, #tpu.memory_space<vmem>>, vector<1x128xf32>
    tpu.vector_store %arg3[%134, %c0_42], %133 {strides = array<i32>} : memref<16x128xf32, #tpu.memory_space<vmem>>, vector<1x128xf32>,
    %c15_i32 = arith.constant 15 : i32
    %136 = arith.addi %0, %c15_i32 : i32
    %137 = arith.index_cast %136 : i32 to index
    %138 = memref.load %arg1[%137] : memref<16xi32, #tpu.memory_space<smem>>
    %139 = arith.index_cast %138 : i32 to index
    %c0_43 = arith.constant 0 : index
    %140 = vector.load %arg2[%139, %c0_43] : memref<32x128xf32, #tpu.memory_space<vmem>>, vector<1x128xf32>
    %cst_44 = arith.constant 11.3137083 : f32
    %141 = vector.broadcast %cst_44 : f32 to vector<1x128xf32>
    %142 = arith.mulf %140, %141 : vector<1x128xf32>
    %143 = arith.index_cast %c15_i32 : i32 to index
    %c0_45 = arith.constant 0 : index
    %144 = vector.load %arg3[%143, %c0_45] : memref<16x128xf32, #tpu.memory_space<vmem>>, vector<1x128xf32>
    tpu.vector_store %arg3[%143, %c0_45], %142 {strides = array<i32>} : memref<16x128xf32, #tpu.memory_space<vmem>>, vector<1x128xf32>,
    %c16_i32_46 = arith.constant 16 : i32
    return
  }
  func.func @transform_0(%arg0: i32, %arg1: memref<16xi32, #tpu.memory_space<smem>>) -> (i32, i32) {
    %c0_i32 = arith.constant 0 : i32
    %c0_i32_0 = arith.constant 0 : i32
    %c0_i32_1 = arith.constant 0 : i32
    return %c0_i32, %c0_i32_0 : i32, i32
  }
  func.func @transform_1(%arg0: i32, %arg1: memref<16xi32, #tpu.memory_space<smem>>) -> (i32, i32) {
    %c0_i32 = arith.constant 0 : i32
    %c0_i32_0 = arith.constant 0 : i32
    return %arg0, %c0_i32 : i32, i32
  }
}

</mosaic_0001>

<bundles_post_ra>
// kernel: tpu_custom_call.1
= control target key start
LH: loop header
LB: loop body
LE: loop exit
PB: predicated region body
PF: predicated region fallthrough
CT: control target
= control target key end

     0   :  { %s231_s9 = smov [#allocation3]   ;;  %s266_s0 = inlined_call_operand.hbm [shape: s32[16], index: 0, kind: input, shape index: {}]   ;;  %s267_s1 = inlined_call_operand.hbm [shape: f32[32,128], index: 1, kind: input, shape index: {}]   ;;  %s268_s2 = inlined_call_operand.hbm [shape: f32[16,128], index: 2, kind: output, shape index: {}]  }
   0x1   :  { %8 = dma.hbm_to_smem %s266_s0, 16, %s231_s9, [#allocation2] }
   0x2   :  { %225 = dma.done.wait [#allocation2], 16 }
   0x3   :  { %226 = vsyncadd [#allocation2], 4294967280 }
   0x4   :  { %10 = sfence }
   0x5   :  { %11 = vsyncpa [#allocation5], 0 }
   0x6   :  { %12 = vsyncpa [#allocation6], 0  ;;  %s232_s12 = smov [#allocation4]  }
   0x7   :  { %s18_s13 = sshll.u32 %s232_s12, 4  ;;  %s19_s13 = int_to_ptr.vmem [resolvable:$true] %s18_s13 }
   0x8   :  { %s193_s14 = scalar_lea.vmem %s19_s13, 512  ;;  %p198_p1 = scmp.lt.s32.totalorder %s19_s13, %s19_s13 }
   0x9   :  { %p194_p0 = scmp.ne.s32.totalorder %s19_s13, %s193_s14  ;;  %p199_p2 = scmp.lt.s32.totalorder %s193_s14, %s193_s14 }
   0xb   :  { %p200_p3 = por %p199_p2, %p198_p1 }
   0xd   :  { %p201_p4 = pnand %p200_p3, %p194_p0 }
   0xf   :  { %204 = shalt.err (!%p201_p4)
}
  0x10   :  { %s233_s15 = smov 128   ;;  %s234_s16 = smov 8  }
  0x11   :  { %24 = dma.hbm_to_vmem [thread:$0]  %s267_s1, 512, %s19_s13, [#allocation5], %s233_s15, %s233_s15, %s234_s16  }
  0x12   :  { %227 = dma.done.wait [#allocation5], 512  }
  0x13   :  { %228 = vsyncadd [#allocation5], 4294966784  ;;  %s29_s18 = sld [smem:[#allocation3]] }
  0x14   :  { %s157_s19 = sld [smem:[#allocation3 + $0x1]] }
  0x15   :  { %s158_s20 = sld [smem:[#allocation3 + $0x2]] }
  0x16   :  { %s159_s21 = sld [smem:[#allocation3 + $0x3]] }
  0x17   :  { %s160_s22 = sld [smem:[#allocation3 + $0x4]] }
  0x18   :  { %s161_s23 = sld [smem:[#allocation3 + $0x5]] }
  0x19   :  { %s162_s24 = sld [smem:[#allocation3 + $0x6]]  ;;  %s30_s25 = scalar_lea.vmem [#allocation4], %s29_s18 }
  0x1a   :  { %v31_v0 = vld [vmem:[%s30_s25] sm:$0x1]  ;;  %s163_s26 = sld [smem:[#allocation3 + $0x7]]  ;;  %s36_s27 = scalar_lea.vmem [#allocation4], %s157_s19 }
  0x1b   :  { %v32_v1 = vmul.f32 11.313708, %v31_v0  ;;  %v37_v2 = vld [vmem:[%s36_s27] sm:$0x1]  ;;  %s42_s28 = scalar_lea.vmem [#allocation4], %s158_s20  ;;  %s164_s5 = sld [smem:[#allocation3 + $0x8]] }
  0x1c   :  { %v38_v3 = vmul.f32 11.313708, %v37_v2  ;;  %v43_v4 = vld [vmem:[%s42_s28] sm:$0x1]  ;;  %s48_s1 = scalar_lea.vmem [#allocation4], %s159_s21  ;;  %s165_s6 = sld [smem:[#allocation3 + $0x9]] }
  0x1d   :  { %33 = vst [vmem:[#allocation7] sm:$0x1] %v32_v1  ;;  %v44_v5 = vmul.f32 11.313708, %v43_v4  ;;  %v49_v6 = vld [vmem:[%s48_s1] sm:$0x1] }
  0x1e   :  { %39 = vst [vmem:[#allocation7 + $0x1] sm:$0x1] %v38_v3  ;;  %v50_v7 = vmul.f32 11.313708, %v49_v6  ;;  %s54_s29 = scalar_lea.vmem [#allocation4], %s160_s22  ;;  %s60_s30 = scalar_lea.vmem [#allocation4], %s161_s23 }
  0x1f   :  { %v55_v8 = vld [vmem:[%s54_s29] sm:$0x1]  ;;  %45 = vst [vmem:[#allocation7 + $0x2] sm:$0x1] %v44_v5  ;;  %s66_s3 = scalar_lea.vmem [#allocation4], %s162_s24  ;;  %s166_s7 = sld [smem:[#allocation3 + $0xa]] }
  0x20   :  { %v56_v9 = vmul.f32 11.313708, %v55_v8  ;;  %v61_v10 = vld [vmem:[%s60_s30] sm:$0x1]  ;;  %51 = vst [vmem:[#allocation7 + $0x3] sm:$0x1] %v50_v7 }
  0x21   :  { %v62_v11 = vmul.f32 11.313708, %v61_v10  ;;  %v67_v12 = vld [vmem:[%s66_s3] sm:$0x1]  ;;  %s72_s4 = scalar_lea.vmem [#allocation4], %s163_s26  ;;  %s167_s8 = sld [smem:[#allocation3 + $0xb]] }
  0x22   :  { %57 = vst [vmem:[#allocation7 + $0x4] sm:$0x1] %v56_v9  ;;  %v68_v13 = vmul.f32 11.313708, %v67_v12  ;;  %v73_v14 = vld [vmem:[%s72_s4] sm:$0x1] }
  0x23   :  { %63 = vst [vmem:[#allocation7 + $0x5] sm:$0x1] %v62_v11  ;;  %v74_v15 = vmul.f32 11.313708, %v73_v14  ;;  %s168_s9 = sld [smem:[#allocation3 + $0xc]]  ;;  %s78_s12 = scalar_lea.vmem [#allocation4], %s164_s5 }
  0x24   :  { %69 = vst [vmem:[#allocation7 + $0x6] sm:$0x1] %v68_v13  ;;  %s169_s10 = sld [smem:[#allocation3 + $0xd]]  ;;  %v79_v16 = vld [vmem:[%s78_s12] sm:$0x1]  ;;  %s84_s14 = scalar_lea.vmem [#allocation4], %s165_s6 }
  0x25   :  { %75 = vst [vmem:[#allocation7 + $0x7] sm:$0x1] %v74_v15  ;;  %s170_s11 = sld [smem:[#allocation3 + $0xe]]  ;;  %v80_v17 = vmul.f32 11.313708, %v79_v16  ;;  %s90_s0 = scalar_lea.vmem [#allocation4], %s166_s7 }
  0x26   :  { %s171_s13 = sld [smem:[#allocation3 + $0xf]]  ;;  %v85_v18 = vld [vmem:[%s84_s14] sm:$0x1]  ;;  %s235_s20 = smov [#allocation7]  }
  0x27   :  { %v86_v19 = vmul.f32 11.313708, %v85_v18  ;;  %v91_v20 = vld [vmem:[%s90_s0] sm:$0x1]  ;;  %81 = vst [vmem:[#allocation7 + $0x8] sm:$0x1] %v80_v17 }
  0x28   :  { %v92_v21 = vmul.f32 11.313708, %v91_v20  ;;  %s96_s17 = scalar_lea.vmem [#allocation4], %s167_s8  ;;  %s129_s21 = sshll.u32 %s235_s20, 4  ;;  %s130_s21 = int_to_ptr.vmem [resolvable:$true] %s129_s21 }
  0x29   :  { %v97_v22 = vld [vmem:[%s96_s17] sm:$0x1]  ;;  %87 = vst [vmem:[#allocation7 + $0x9] sm:$0x1] %v86_v19  ;;  %s102_s18 = scalar_lea.vmem [#allocation4], %s168_s9  ;;  %s205_s24 = scalar_lea.vmem %s130_s21, 256 }
  0x2a   :  { %v98_v23 = vmul.f32 11.313708, %v97_v22  ;;  %v103_v24 = vld [vmem:[%s102_s18] sm:$0x1]  ;;  %93 = vst [vmem:[#allocation7 + $0xa] sm:$0x1] %v92_v21  ;;  %p206_p5 = scmp.ne.s32.totalorder %s130_s21, %s205_s24  ;;  %p210_p6 = scmp.lt.s32.totalorder %s130_s21, %s130_s21 }
  0x2b   :  { %v104_v25 = vmul.f32 11.313708, %v103_v24  ;;  %s108_s19 = scalar_lea.vmem [#allocation4], %s169_s10  ;;  %s114_s22 = scalar_lea.vmem [#allocation4], %s170_s11 }
  0x2c   :  { %v109_v26 = vld [vmem:[%s108_s19] sm:$0x1]  ;;  %99 = vst [vmem:[#allocation7 + $0xb] sm:$0x1] %v98_v23  ;;  %s120_s23 = scalar_lea.vmem [#allocation4], %s171_s13  ;;  %p211_p7 = scmp.lt.s32.totalorder %s205_s24, %s205_s24 }
  0x2d   :  { %v110_v27 = vmul.f32 11.313708, %v109_v26  ;;  %v115_v28 = vld [vmem:[%s114_s22] sm:$0x1]  ;;  %105 = vst [vmem:[#allocation7 + $0xc] sm:$0x1] %v104_v25 }
  0x2e   :  { %v116_v29 = vmul.f32 11.313708, %v115_v28  ;;  %v121_v30 = vld [vmem:[%s120_s23] sm:$0x1]  ;;  %p212_p8 = por %p211_p7, %p210_p6 }
  0x2f   :  { %111 = vst [vmem:[#allocation7 + $0xd] sm:$0x1] %v110_v27  ;;  %v122_v31 = vmul.f32 11.313708, %v121_v30 }
  0x30   :  { %117 = vst [vmem:[#allocation7 + $0xe] sm:$0x1] %v116_v29  ;;  %p213_p9 = pnand %p212_p8, %p206_p5 }
  0x31   :  { %123 = vst [vmem:[#allocation7 + $0xf] sm:$0x1] %v122_v31 }
  0x32   :  { %216 = shalt.err (!%p213_p9)
}
  0x33   :  { %135 = dma.vmem_to_hbm [thread:$0]  %s130_s21, 256, %s268_s2, [#allocation6], %s233_s15, %s233_s15, %s234_s16  }
  0x34   :  { %229 = dma.done.wait [#allocation6], 256  }
  0x35   :  { %230 = vsyncadd [#allocation6], 4294967040 }
  0x36   :  { %139 = vsyncpa [#allocation5], 1 }
  0x37   :  { %140 = vsyncpa [#allocation6], 1 }

</bundles_post_ra>
